<compile_context>
chip_gen: v5e
topology: v5e:2x2
jax: 0.10.0
libtpu: 0.0.40
codegen_flags: <defaults>
</compile_context>

<pallas_src>
import jax
import jax.numpy as jnp
from jax.experimental import pallas as pl
from jax.experimental.pallas import tpu as pltpu

EPS = 1e-3
_LANE = 128
_TILE_M = 256
_VMEM_LIMIT = 48 * 1024 * 1024


def _round_up(x, m):
    return (x + m - 1) // m * m


# --------------------------- phase 1: matmul + BN stats ---------------------------
def _matmul_stats_kernel(p_ref, w_ref, y_ref, sum_ref, sumsq_ref):
    # grid = (oc_tiles, m_tiles); m is innermost and marked "arbitrary" because the
    # (1, toc) sum/sumsq output blocks stay resident (accumulate) across it.
    i = pl.program_id(1)

    @pl.when(i == 0)
    def _():
        sum_ref[...] = jnp.zeros_like(sum_ref)
        sumsq_ref[...] = jnp.zeros_like(sumsq_ref)

    y = jnp.dot(p_ref[...], w_ref[...], preferred_element_type=jnp.float32)
    y_ref[...] = y
    # single-pass BatchNorm statistics; zero-padded rows/channels contribute nothing
    sum_ref[...] += jnp.sum(y, axis=0, keepdims=True)
    sumsq_ref[...] += jnp.sum(y * y, axis=0, keepdims=True)


# --------------------------- phase 2: normalize + SiLU ----------------------------
def _norm_silu_kernel(y_ref, scale_ref, shift_ref, o_ref):
    # BN affine folded into per-channel scale/shift -> one FMA, then SiLU (EUP).
    xn = y_ref[...] * scale_ref[...] + shift_ref[...]
    o_ref[...] = xn * jax.nn.sigmoid(xn)


# ----------------------------------- wrapper --------------------------------------
def conv_bn_silu_nhwc(x_nhwc, weight, gamma, beta, *, stride=1, padding=1,
                      compute_dtype=jnp.bfloat16, tile_m=_TILE_M):
    """x_nhwc: (N, H, W, C); weight: (OC, C, KH, KW) (PyTorch OIHW layout).

    Returns (N, OH, OW, OC) float32. Conv has no bias; BN uses training-mode
    (biased) batch statistics with eps=1e-3; activation is SiLU.
    """
    N, H, W, C = x_nhwc.shape
    OC, C_w, KH, KW = weight.shape
    # TODO(synk): grouped / depthwise conv (groups > 1) is not supported by this
    # dense im2col kernel.
    assert C_w == C, "grouped conv not supported"

    OH = (H + 2 * padding - KH) // stride + 1
    OW = (W + 2 * padding - KW) // stride + 1
    M = N * OH * OW
    K = C * KH * KW

    # --- im2col in compute_dtype (bf16 halves the KH*KW expansion's HBM bytes) ---
    # TODO(synk): build the patches inside the kernel from the padded NHWC input
    # to avoid materializing the KH*KW im2col expansion in HBM at all.
    xq = x_nhwc.astype(compute_dtype)
    xp = jnp.pad(xq, ((0, 0), (padding, padding), (padding, padding), (0, 0)))
    cols = [xp[:, kh:kh + stride * OH:stride, kw:kw + stride * OW:stride, :]
            for kh in range(KH) for kw in range(KW)]
    # (N, OH, OW, C, KH*KW) -> (M, K); K ordering = c*(KH*KW) + kh*KW + kw,
    # matching weight.reshape(OC, C*KH*KW).
    patches = jnp.stack(cols, axis=-1).reshape(M, K)
    w_mat = weight.reshape(OC, K).T.astype(compute_dtype)  # (K, OC)

    # --- pad to MXU / lane friendly shapes ---
    K_pad = _round_up(K, _LANE)
    OC_pad = _round_up(OC, _LANE)
    M_pad = _round_up(M, tile_m)
    toc = 256 if OC_pad % 256 == 0 else 128  # 256-wide channel tiles on v6e/v7x

    patches = jnp.pad(patches, ((0, M_pad - M), (0, K_pad - K)))
    w_mat = jnp.pad(w_mat, ((0, K_pad - K), (0, OC_pad - OC)))
    gamma_p = jnp.pad(gamma.astype(jnp.float32).reshape(1, OC),
                      ((0, 0), (0, OC_pad - OC)))
    beta_p = jnp.pad(beta.astype(jnp.float32).reshape(1, OC),
                     ((0, 0), (0, OC_pad - OC)))

    n_m = M_pad // tile_m
    n_oc = OC_pad // toc

    # ---------------- phase 1: conv-as-matmul + per-channel sum / sumsq ----------
    y, ch_sum, ch_sumsq = pl.pallas_call(
        _matmul_stats_kernel,
        out_shape=(
            jax.ShapeDtypeStruct((M_pad, OC_pad), jnp.float32),
            jax.ShapeDtypeStruct((1, OC_pad), jnp.float32),
            jax.ShapeDtypeStruct((1, OC_pad), jnp.float32),
        ),
        grid=(n_oc, n_m),
        in_specs=[
            pl.BlockSpec((tile_m, K_pad), lambda j, i: (i, 0)),
            # weight block depends only on j -> fetched once per oc tile,
            # resident across the whole inner m loop.
            pl.BlockSpec((K_pad, toc), lambda j, i: (0, j)),
        ],
        out_specs=(
            pl.BlockSpec((tile_m, toc), lambda j, i: (i, j)),
            pl.BlockSpec((1, toc), lambda j, i: (0, j)),
            pl.BlockSpec((1, toc), lambda j, i: (0, j)),
        ),
        compiler_params=pltpu.CompilerParams(
            dimension_semantics=("parallel", "arbitrary"),
            vmem_limit_bytes=_VMEM_LIMIT),
    )(patches, w_mat)

    # --- fold BN into per-channel scale/shift, computed once (tiny, in f32) ---
    inv_count = jnp.float32(1.0 / M)
    mean = ch_sum * inv_count
    var = jnp.maximum(ch_sumsq * inv_count - mean * mean, 0.0)
    scale = gamma_p * jax.lax.rsqrt(var + EPS)
    shift = beta_p - mean * scale

    # ---------------- phase 2: fused (y * scale + shift) -> SiLU -----------------
    out_flat = pl.pallas_call(
        _norm_silu_kernel,
        out_shape=jax.ShapeDtypeStruct((M_pad, OC_pad), jnp.float32),
        grid=(n_oc, n_m),
        in_specs=[
            pl.BlockSpec((tile_m, toc), lambda j, i: (i, j)),
            # scale/shift depend only on j -> no redundant per-m-step DMA.
            pl.BlockSpec((1, toc), lambda j, i: (0, j)),
            pl.BlockSpec((1, toc), lambda j, i: (0, j)),
        ],
        out_specs=pl.BlockSpec((tile_m, toc), lambda j, i: (i, j)),
        compiler_params=pltpu.CompilerParams(
            dimension_semantics=("parallel", "parallel"),
            vmem_limit_bytes=_VMEM_LIMIT),
    )(y, scale, shift)

    return out_flat[:M, :OC].reshape(N, OH, OW, OC)


def basic_cnn_block(x_nchw, weight, gamma, beta, *, stride=1, padding=1,
                    compute_dtype=jnp.bfloat16):
    """PyTorch-parity adapter (NCHW in / NCHW out). In a full NHWC network the
    conv_bn_silu_nhwc entry point should be chained directly (no transposes)."""
    x_nhwc = jnp.transpose(x_nchw, (0, 2, 3, 1))
    out_nhwc = conv_bn_silu_nhwc(x_nhwc, weight, gamma, beta, stride=stride,
                                 padding=padding, compute_dtype=compute_dtype)
    return jnp.transpose(out_nhwc, (0, 3, 1, 2))


# ---------------------------------- reference --------------------------------------
def _reference(x_nchw, weight, gamma, beta, *, stride=1, padding=1,
               compute_dtype=jnp.float32):
    xq = x_nchw.astype(compute_dtype)
    wq = weight.astype(compute_dtype)
    y = jax.lax.conv_general_dilated(
        xq, wq, window_strides=(stride, stride),
        padding=[(padding, padding), (padding, padding)],
        dimension_numbers=("NCHW", "OIHW", "NCHW"),
        preferred_element_type=jnp.float32)
    mean = jnp.mean(y, axis=(0, 2, 3), keepdims=True)
    var = jnp.mean((y - mean) ** 2, axis=(0, 2, 3), keepdims=True)
    xn = (y - mean) * jax.lax.rsqrt(var + EPS)
    xn = xn * gamma.reshape(1, -1, 1, 1) + beta.reshape(1, -1, 1, 1)
    return xn * jax.nn.sigmoid(xn)


if __name__ == "__main__":
    key = jax.random.PRNGKey(0)
    kx, kw, kx2, kw2 = jax.random.split(key, 4)

    # ---- test 1: generic block (N=2, C=4, H=W=16, OC=8, 3x3, stride 1) ----
    N, C, H, W = 2, 4, 16, 16
    OC, KH, KW = 8, 3, 3
    x = jax.random.normal(kx, (N, C, H, W), dtype=jnp.float32)
    conv_w = jax.random.normal(kw, (OC, C, KH, KW), dtype=jnp.float32) * 0.1
    gamma = jnp.ones((OC,), dtype=jnp.float32)      # BatchNorm2d default init
    beta = jnp.zeros((OC,), dtype=jnp.float32)

    out = jax.block_until_ready(
        basic_cnn_block(x, conv_w, gamma, beta, stride=1, padding=1,
                        compute_dtype=jnp.bfloat16))
    ref = _reference(x, conv_w, gamma, beta, stride=1, padding=1,
                     compute_dtype=jnp.bfloat16)
    assert out.shape == (N, OC, H, W)
    assert jnp.allclose(out, ref, atol=1e-3, rtol=1e-3), \
        float(jnp.max(jnp.abs(out - ref)))

    # ---- test 2: EfficientNet-style stem block (3 -> 32, 3x3, stride 2) ----
    N2, C2, H2, W2 = 2, 3, 16, 16
    OC2 = 32
    x2 = jax.random.normal(kx2, (N2, C2, H2, W2), dtype=jnp.float32)
    w2 = jax.random.normal(kw2, (OC2, C2, 3, 3), dtype=jnp.float32) * 0.1
    g2 = jnp.ones((OC2,), dtype=jnp.float32)
    b2 = jnp.zeros((OC2,), dtype=jnp.float32)

    out2 = jax.block_until_ready(
        basic_cnn_block(x2, w2, g2, b2, stride=2, padding=1,
                        compute_dtype=jnp.bfloat16))
    ref2 = _reference(x2, w2, g2, b2, stride=2, padding=1,
                      compute_dtype=jnp.bfloat16)
    assert out2.shape == (N2, OC2, 8, 8)
    assert jnp.allclose(out2, ref2, atol=1e-3, rtol=1e-3), \
        float(jnp.max(jnp.abs(out2 - ref2)))

    # ---- f32-operand path (smoke + loose check: default-precision f32 matmul on
    # TPU may use a different bf16-pass decomposition than the XLA conv) ----
    out3 = jax.block_until_ready(
        basic_cnn_block(x, conv_w, gamma, beta, stride=1, padding=1,
                        compute_dtype=jnp.float32))
    ref3 = _reference(x, conv_w, gamma, beta, stride=1, padding=1,
                      compute_dtype=jnp.float32)
    assert jnp.allclose(out3, ref3, atol=5e-2, rtol=5e-2), \
        float(jnp.max(jnp.abs(out3 - ref3)))

    print("KERNEL_OK")
</pallas_src>

<mosaic_0001>
module attributes {stable_mosaic.version = 11 : i64} {
  func.func @_matmul_stats_kernel(%arg0: i32, %arg1: i32, %arg2: memref<256x128xbf16, #tpu.memory_space<vmem>>, %arg3: memref<128x128xbf16, #tpu.memory_space<vmem>>, %arg4: memref<256x128xf32, #tpu.memory_space<vmem>>, %arg5: memref<1x128xf32, #tpu.memory_space<vmem>>, %arg6: memref<1x128xf32, #tpu.memory_space<vmem>>) attributes {dimension_semantics = [#tpu.dimension_semantics<parallel>, #tpu.dimension_semantics<arbitrary>], iteration_bounds = array<i64: 1, 2>, scalar_prefetch = 0 : i64, scratch_operands = 0 : i64, tpu.core_type = #tpu.core_type<tc>, window_params = [{transform_indices = @transform_0, window_bounds = array<i64: 256, 128>}, {transform_indices = @transform_1, window_bounds = array<i64: 128, 128>}, {transform_indices = @transform_2, window_bounds = array<i64: 256, 128>}, {transform_indices = @transform_3, window_bounds = array<i64: 1, 128>}, {transform_indices = @transform_4, window_bounds = array<i64: 1, 128>}]} {
    %c0_i32 = arith.constant 0 : i32
    %0 = arith.cmpi eq, %arg1, %c0_i32 : i32
    %1 = arith.extui %0 : i1 to i32
    %c0_i32_0 = arith.constant 0 : i32
    %2 = arith.cmpi ne, %1, %c0_i32_0 : i32
    scf.if %2 {
      %cst_16 = arith.constant 0.000000e+00 : f32
      %18 = vector.broadcast %cst_16 : f32 to vector<1x128xf32>
      %c0_17 = arith.constant 0 : index
      %c0_18 = arith.constant 0 : index
      %19 = vector.load %arg5[%c0_17, %c0_18] : memref<1x128xf32, #tpu.memory_space<vmem>>, vector<1x128xf32>
      tpu.vector_store %arg5[%c0_17, %c0_18], %18 {strides = array<i32>} : memref<1x128xf32, #tpu.memory_space<vmem>>, vector<1x128xf32>,
      %cst_19 = arith.constant 0.000000e+00 : f32
      %20 = vector.broadcast %cst_19 : f32 to vector<1x128xf32>
      %c0_20 = arith.constant 0 : index
      %c0_21 = arith.constant 0 : index
      %21 = vector.load %arg6[%c0_20, %c0_21] : memref<1x128xf32, #tpu.memory_space<vmem>>, vector<1x128xf32>
      tpu.vector_store %arg6[%c0_20, %c0_21], %20 {strides = array<i32>} : memref<1x128xf32, #tpu.memory_space<vmem>>, vector<1x128xf32>,
    } else {
    }
    %c0 = arith.constant 0 : index
    %c0_1 = arith.constant 0 : index
    %3 = vector.load %arg2[%c0, %c0_1] : memref<256x128xbf16, #tpu.memory_space<vmem>>, vector<256x128xbf16>
    %c0_2 = arith.constant 0 : index
    %c0_3 = arith.constant 0 : index
    %4 = vector.load %arg3[%c0_2, %c0_3] : memref<128x128xbf16, #tpu.memory_space<vmem>>, vector<128x128xbf16>
    %cst = arith.constant dense<0.000000e+00> : vector<256x128xf32>
    %5 = tpu.matmul %3, %4, %cst {dimension_numbers = #tpu.dot_dimension_numbers<[1], [0], [0], [1], [0, 0, 1, 1], [], []>} : vector<256x128xbf16>, vector<128x128xbf16>, vector<256x128xf32> -> vector<256x128xf32>
    %c0_4 = arith.constant 0 : index
    %c0_5 = arith.constant 0 : index
    %6 = vector.load %arg4[%c0_4, %c0_5] : memref<256x128xf32, #tpu.memory_space<vmem>>, vector<256x128xf32>
    tpu.vector_store %arg4[%c0_4, %c0_5], %5 {strides = array<i32>} : memref<256x128xf32, #tpu.memory_space<vmem>>, vector<256x128xf32>,
    %c0_6 = arith.constant 0 : index
    %c0_7 = arith.constant 0 : index
    %7 = vector.load %arg5[%c0_6, %c0_7] : memref<1x128xf32, #tpu.memory_space<vmem>>, vector<1x128xf32>
    %cst_8 = arith.constant dense<0.000000e+00> : vector<128xf32>
    %8 = vector.multi_reduction <add>, %5, %cst_8 [0] : vector<256x128xf32> to vector<128xf32>
    %9 = vector.shape_cast %8 : vector<128xf32> to vector<1x128xf32>
    %10 = arith.addf %7, %9 : vector<1x128xf32>
    %c0_9 = arith.constant 0 : index
    %c0_10 = arith.constant 0 : index
    %11 = vector.load %arg5[%c0_9, %c0_10] : memref<1x128xf32, #tpu.memory_space<vmem>>, vector<1x128xf32>
    tpu.vector_store %arg5[%c0_9, %c0_10], %10 {strides = array<i32>} : memref<1x128xf32, #tpu.memory_space<vmem>>, vector<1x128xf32>,
    %c0_11 = arith.constant 0 : index
    %c0_12 = arith.constant 0 : index
    %12 = vector.load %arg6[%c0_11, %c0_12] : memref<1x128xf32, #tpu.memory_space<vmem>>, vector<1x128xf32>
    %13 = arith.mulf %5, %5 : vector<256x128xf32>
    %cst_13 = arith.constant dense<0.000000e+00> : vector<128xf32>
    %14 = vector.multi_reduction <add>, %13, %cst_13 [0] : vector<256x128xf32> to vector<128xf32>
    %15 = vector.shape_cast %14 : vector<128xf32> to vector<1x128xf32>
    %16 = arith.addf %12, %15 : vector<1x128xf32>
    %c0_14 = arith.constant 0 : index
    %c0_15 = arith.constant 0 : index
    %17 = vector.load %arg6[%c0_14, %c0_15] : memref<1x128xf32, #tpu.memory_space<vmem>>, vector<1x128xf32>
    tpu.vector_store %arg6[%c0_14, %c0_15], %16 {strides = array<i32>} : memref<1x128xf32, #tpu.memory_space<vmem>>, vector<1x128xf32>,
    return
  }
  func.func @transform_0(%arg0: i32, %arg1: i32) -> (i32, i32) {
    %c0_i32 = arith.constant 0 : i32
    %c0_i32_0 = arith.constant 0 : i32
    return %arg1, %c0_i32 : i32, i32
  }
  func.func @transform_1(%arg0: i32, %arg1: i32) -> (i32, i32) {
    %c0_i32 = arith.constant 0 : i32
    %c0_i32_0 = arith.constant 0 : i32
    return %c0_i32, %arg0 : i32, i32
  }
  func.func @transform_2(%arg0: i32, %arg1: i32) -> (i32, i32) {
    %c0_i32 = arith.constant 0 : i32
    return %arg1, %arg0 : i32, i32
  }
  func.func @transform_3(%arg0: i32, %arg1: i32) -> (i32, i32) {
    %c0_i32 = arith.constant 0 : i32
    %c0_i32_0 = arith.constant 0 : i32
    return %c0_i32, %arg0 : i32, i32
  }
  func.func @transform_4(%arg0: i32, %arg1: i32) -> (i32, i32) {
    %c0_i32 = arith.constant 0 : i32
    %c0_i32_0 = arith.constant 0 : i32
    return %c0_i32, %arg0 : i32, i32
  }
}

</mosaic_0001>

<bundles_post_ra>
// kernel: tpu_custom_call.1
= control target key start
LH: loop header
LB: loop body
LE: loop exit
PB: predicated region body
PF: predicated region fallthrough
CT: control target
= control target key end

     0   :  { %s1722_s0 = inlined_call_operand.hbm [shape: bf16[512,128], index: 0, kind: input, shape index: {}]   ;;  %s1723_s1 = inlined_call_operand.hbm [shape: bf16[128,128], index: 1, kind: input, shape index: {}]   ;;  %s1724_s2 = inlined_call_operand.hbm [shape: f32[512,128], index: 2, kind: output, shape index: {0}]   ;;  %s1725_s3 = inlined_call_operand.hbm [shape: f32[1,128], index: 3, kind: output, shape index: {1}]   ;;  %s1726_s4 = inlined_call_operand.hbm [shape: f32[1,128], index: 4, kind: output, shape index: {2}]  }
   0x1   :  { %1732 = sst [smem:[#allocation17_spill]] %s1723_s1 }
   0x2   :  { %10 = vsyncpa [#allocation3], 0 }
   0x3   :  { %12 = vsyncpa [#allocation3 + $0x1], 0 }
   0x4   :  { %13 = vsyncpa [#allocation6], 0 }
   0x5   :  { %14 = vsyncpa [#allocation4], 0 }
   0x6   :  { %16 = vsyncpa [#allocation4 + $0x1], 0 }
   0x7   :  { %17 = vsyncpa [#allocation9], 0  ;;  %s1359_s15 = smov 0   ;;  %s1361_s16 = smov 0  }
   0x8   :  { %s1363_s17 = smov 0   ;;  %s1365_s18 = smov 0  }
   0x9   :  { %s1367_s19 = smov 0   ;;  %s1369_s20 = smov 0  }
   0xa LB: > { %1733 = sst [smem:[#allocation15_spill]] %s1324_s20  ;;  %s858_s21 = sadd.s32 4294967295, %s1324_s20   ;;  %s1324_s20 = sphi %s1369_s20, %s23_s20   ;;  %s1320_s19 = sphi %s1367_s19, %s1751_s19   ;;  %s1316_s18 = sphi %s1365_s18, %s1750_s18   ;;  %s1312_s17 = sphi %s1363_s17, %s1749_s17   ;;  %s1308_s16 = sphi %s1361_s16, %s1748_s16   ;;  %s1304_s15 = sphi %s1359_s15, %s1747_s15  }
   0xb   : > { %s859_s22 = sadd.s32 4294967294, %s1324_s20   ;;  %p55_p0 = scmp.ne.s32.totalorder %s1308_s16, %s1304_s15 }
   0xc   : > { %p1393_p1 = scmp.eq.s32.totalorder %s858_s21, 0  ;;  %p1397_p2 = scmp.eq.s32.totalorder %s858_s21, 1 }
   0xd   : > { %p113_p3 = scmp.eq.s32.totalorder %s859_s22, 1  ;;  %p860_p5 = scmp.ge.s32.totalorder %s1324_s20, 1 }
   0xe   : > { %p1403_p4 = por %p1393_p1, %p55_p0  ;;  %p172_p7 = scmp.lt.s32.totalorder %s1324_s20, 3 }
   0xf   : > { %p1408_p6 = por %p113_p3, %p55_p0  ;;  %s1738_s1 = sld [smem:[#allocation17_spill]] }
  0x10   : > { %p1416_p8 = pnand %p860_p5, %p172_p7  ;;  %s1326_s5 = smov [#allocation5]  }
  0x11   : > { %s187_s6 = sshll.u32 %s1326_s5, 4  ;;  %p862_p11 = scmp.ge.s32.totalorder %s1324_s20, 2  ;;  %s188_s6 = int_to_ptr.vmem [resolvable:$true] %s187_s6 }
  0x12   : > { %p1042_p9 = pneg %p1416_p8  ;;  %s1727_s7 = smov 64  }
  0x13   : > { %s1728_s8 = smov 4   ;;  %s32_s9 = sadd.s32 1, %s1320_s19 }
  0x14   : > { %p1043_p10 = pnand %p1042_p9, %p1393_p1  ;;  %p33_p12 = scmp.ge.s32.totalorder %s32_s9, 2 }
  0x15   : > { %s185_s29 = sshll.u32 %s1738_s1, 4  ;;  %s42_s10 = sadd.s32 1, %s1312_s17  ;;  %s186_s29 = int_to_ptr.hbm [resolvable:$true] %s185_s29 }
  0x16   : > { %1045 = dma.hbm_to_vmem [thread:$0]  (!%p1043_p10), %s186_s29, 1024, %s188_s6, [#allocation6], %s1727_s7, %s1727_s7, %s1728_s8  }
  0x17   : > { %p49_p13 = scmp.ne.s32.totalorder %s1312_s17, %s1308_s16  ;;  %p50_p0 = scmp.eq.s32.totalorder %s1324_s20, 0 }
  0x18   : > { %s1753_s9 = smov (%p33_p12, %s32_s9), 0  ;;  %p1055_p7 = scmp.lt.s32.totalorder %s1324_s20, 2 }
  0x19   : > { %1740 = sst [smem:[#allocation16_spill]] %s1753_s9  ;;  %p1435_p3 = por %p50_p0, %p49_p13 }
  0x1a   : > { %p1441_p5 = por %p1397_p2, %p49_p13  ;;  %s39_s13 = ssub.s32 %s1320_s19, %s1753_s9 }
  0x1b   : > { %p40_p9 = scmp.eq.s32.totalorder %s39_s13, 0  ;;  %s201_s14 = sand.u32 1, %s1312_s17  }
  0x1c   : > { %s863_s21 = sshll.u32 %s201_s14, 7  ;;  %s976_s27 = sshll.u32 %s1320_s19, 7 }
  0x1d   : > { %s1450_s22 = scalar_select %p40_p9, %s1312_s17, %s42_s10  }
  0x1e   : > { %s210_s5 = scalar_lea.hbm %s1722_s0, %s976_s27  ;;  %s205_s6 = scalar_lea.vmem [#allocation2], %s863_s21 }
  0x1f   : > { %s213_s7 = sshll.u32 %s205_s6, 4  ;;  %s211_s8 = sshll.u32 %s210_s5, 4  ;;  %s214_s7 = int_to_ptr.vmem [resolvable:$true] %s213_s7  ;;  %s212_s8 = int_to_ptr.hbm [resolvable:$true] %s211_s8 }
  0x20   : > { %p1047_p10 = pnand %p1055_p7, %p1435_p3  ;;  %s202_s1 = scalar_lea.sflag [#allocation3], %s201_s14 }
  0x21   : > { %s1743_s9 = smov 4   ;;  %s1744_s20 = smov 64  }
  0x22   : > { %1049 = dma.hbm_to_vmem [thread:$0]  (!%p1047_p10), %s212_s8, 2048, %s214_s7, %s202_s1, %s1744_s20, %s1744_s20, %s1743_s9  }
  0x23   : > { %225 = sbr.rel (%p1416_p8) target bundleno = 337 (0x151), region = 28  ;;  %s1464_s10 = sand.u32 (!%p1416_p8), 1, %s1308_s16  }
  0x24   : > { %s867_s13 = sshll.u32 (!%p1416_p8), %s1464_s10, 7  ;;  %s228_s21 = scalar_lea.sflag (!%p1416_p8), [#allocation3], %s1464_s10 }
  0x25   : > { %s1468_s27 = scalar_lea.vmem (!%p1416_p8), [#allocation2], %s867_s13 }
  0x28   : > { %1287 = dma.done.wait (%p1403_p4), %s228_s21, 2048  }
  0x29   : > { %1289 = vsyncadd (%p1403_p4), %s228_s21, 4294965248 }
  0x2a   : > { %1291 = dma.done.wait (%p1393_p1), [#allocation6], 1024  }
  0x2b   : > { %1293 = vsyncadd (%p1393_p1), [#allocation6], 4294966272  ;;  %s869_s1 = sshll.u32 %s1464_s10, 8  ;;  %p870_p8 = scmp.ne.s32.totalorder %s1316_s18, 0 }
  0x2c   : > { %s1479_s20 = scalar_lea.vmem [#allocation7], %s869_s1 }
  0x2d   : > { %267 = sbr.rel (%p870_p8) target bundleno = 53 (0x35), region = 40 }
  0x32   : > { %v1329_v0 = vmov 0.0  }
  0x33   : > { %268 = vst [vmem:[#allocation8] sm:$0x1] %v1329_v0 }
  0x34   : > { %269 = vst [vmem:[#allocation10] sm:$0x1] %v1329_v0 }
  0x35 PF: > { %v1000_v1 = vld [vmem:[#allocation5 + $0x38] sm:$0xff]  ;;  %v999_v2 = vld [vmem:[#allocation5 + $0x30] sm:$0xff]  ;;  %v998_v3 = vld [vmem:[#allocation5 + $0x28] sm:$0xff]  ;;  %s1001_s23 = sshll.u32 %s1316_s18, 8  ;;  %s709_s7 = sshll.u32 %s1479_s20, 4  ;;  %s1605_s7 = int_to_ptr.vmem [resolvable:$true] %s709_s7 }
  0x36   : > { %462 = vmatpush.bf16.msra.mxu0 %v1000_v1  ;;  %1002 = vmatpush.bf16.msra.mxu1 %v1000_v1  ;;  %v997_v4 = vld [vmem:[#allocation5 + $0x20] sm:$0xff]  ;;  %v996_v5 = vld [vmem:[#allocation5 + $0x18] sm:$0xff]  ;;  %v995_v6 = vld [vmem:[#allocation5 + $0x10] sm:$0xff]  ;;  %s708_s18 = scalar_lea.hbm %s1724_s2, %s1001_s23  ;;  %s696_s9 = scalar_lea.sflag [#allocation4], %s1464_s10 }
  0x37   : > { %1003 = vmatpush.bf16.msra.mxu2 %v1000_v1  ;;  %1004 = vmatpush.bf16.msra.mxu3 %v1000_v1  ;;  %v994_v7 = vld [vmem:[#allocation5 + $0x8] sm:$0xff]  ;;  %v993_v8 = vld [vmem:[#allocation5] sm:$0xff]  ;;  %v979_v17 = vld [vmem:[%s1468_s27 + $0x10] sm:$0xff]  ;;  %s711_s8 = sshll.u32 %s708_s18, 4  ;;  %s1198_s5 = scalar_lea.hbm %s1724_s2, 512  ;;  %s1607_s8 = int_to_ptr.hbm [resolvable:$true] %s711_s8 }
  0x38   : > { %v977_v9 = vld [vmem:[%s1468_s27] sm:$0xff]  ;;  %v978_v13 = vld [vmem:[%s1468_s27 + $0x8] sm:$0xff]  ;;  %v983_v18 = vld [vmem:[%s1468_s27 + $0x30] sm:$0xff]  ;;  %s1192_s11 = sshra.s32 %s1607_s8, 4  ;;  %s1193_s11 = int_to_ptr.hbm [resolvable:$true] %s1192_s11 }
  0x39   : > { %v981_v10 = vld [vmem:[%s1468_s27 + $0x20] sm:$0xff]  ;;  %v982_v14 = vld [vmem:[%s1468_s27 + $0x28] sm:$0xff]  ;;  %v987_v19 = vld [vmem:[%s1468_s27 + $0x50] sm:$0xff]  ;;  %s1194_s14 = scalar_lea.hbm %s1193_s11, 256  ;;  %p1199_p13 = scmp.lt.s32.totalorder %s1193_s11, %s1724_s2 }
  0x3a   : > { %463 = vmatpush.bf16.msra.mxu0 %v999_v2  ;;  %1005 = vmatpush.bf16.msra.mxu1 %v999_v2  ;;  %v985_v11 = vld [vmem:[%s1468_s27 + $0x40] sm:$0xff]  ;;  %v986_v15 = vld [vmem:[%s1468_s27 + $0x48] sm:$0xff]  ;;  %v991_v20 = vld [vmem:[%s1468_s27 + $0x70] sm:$0xff]  ;;  %p1195_p1 = scmp.ne.s32.totalorder %s1193_s11, %s1194_s14  ;;  %p1200_p0 = scmp.lt.s32.totalorder %s1198_s5, %s1194_s14 }
  0x3b   : > { %1006 = vmatpush.bf16.msra.mxu2 %v999_v2  ;;  %1007 = vmatpush.bf16.msra.mxu3 %v999_v2  ;;  %v989_v12 = vld [vmem:[%s1468_s27 + $0x60] sm:$0xff]  ;;  %v990_v16 = vld [vmem:[%s1468_s27 + $0x68] sm:$0xff]  ;;  %v980_v21 = vld [vmem:[%s1468_s27 + $0x18] sm:$0xff] }
  0x3c   : > { %v984_v22 = vld [vmem:[%s1468_s27 + $0x38] sm:$0xff]  ;;  %p1196_p4 = pnand %p1195_p1, %p1441_p5  ;;  %p1201_p3 = por %p1200_p0, %p1199_p13 }
  0x3d   : > { %v988_v23 = vld [vmem:[%s1468_s27 + $0x58] sm:$0xff] }
  0x3e   : > { %464 = vmatpush.bf16.msra.mxu0 %v998_v3  ;;  %1008 = vmatpush.bf16.msra.mxu1 %v998_v3  ;;  %v992_v24 = vld [vmem:[%s1468_s27 + $0x78] sm:$0xff]  ;;  %p1197_p12 = pneg %p1196_p4 }
  0x3f   : > { %1009 = vmatpush.bf16.msra.mxu2 %v998_v3  ;;  %1010 = vmatpush.bf16.msra.mxu3 %v998_v3 }
  0x40   : > { %p1202_p7 = pnand %p1201_p3, %p1197_p12 }
  0x42   : > { %465 = vmatpush.bf16.msra.mxu0 %v997_v4  ;;  %1011 = vmatpush.bf16.msra.mxu1 %v997_v4 }
  0x43   : > { %1012 = vmatpush.bf16.msra.mxu2 %v997_v4  ;;  %1013 = vmatpush.bf16.msra.mxu3 %v997_v4 }
  0x46   : > { %466 = vmatpush.bf16.msra.mxu0 %v996_v5  ;;  %1014 = vmatpush.bf16.msra.mxu1 %v996_v5 }
  0x47   : > { %1015 = vmatpush.bf16.msra.mxu2 %v996_v5  ;;  %1016 = vmatpush.bf16.msra.mxu3 %v996_v5 }
  0x4a   : > { %467 = vmatpush.bf16.msra.mxu0 %v995_v6  ;;  %1017 = vmatpush.bf16.msra.mxu1 %v995_v6 }
  0x4b   : > { %1018 = vmatpush.bf16.msra.mxu2 %v995_v6  ;;  %1019 = vmatpush.bf16.msra.mxu3 %v995_v6 }
  0x4e   : > { %468 = vmatpush.bf16.msra.mxu0 %v994_v7  ;;  %1020 = vmatpush.bf16.msra.mxu1 %v994_v7 }
  0x4f   : > { %1021 = vmatpush.bf16.msra.mxu2 %v994_v7  ;;  %1022 = vmatpush.bf16.msra.mxu3 %v994_v7 }
  0x52   : > { %469 = vmatpush.bf16.msra.mxu0 %v993_v8  ;;  %1023 = vmatpush.bf16.msra.mxu1 %v993_v8 }
  0x53   : > { %1024 = vmatpush.bf16.msra.mxu2 %v993_v8  ;;  %1025 = vmatpush.bf16.msra.mxu3 %v993_v8 }
  0x55   : > { %470 = vmatmul.bf16.vlgmr.msra.gmra.mxu0 %v977_v9  ;;  %490 = vmatmul.bf16.vlgmr.msra.gmra.mxu1 %v981_v10 }
  0x56   : > { %510 = vmatmul.bf16.vlgmr.msra.gmra.mxu2 %v985_v11  ;;  %530 = vmatmul.bf16.vlgmr.msra.gmra.mxu3 %v989_v12 }
  0x65   : > { %475 = vmatmul.bf16.gmra.mxu0 %v978_v13  ;;  %495 = vmatmul.bf16.gmra.mxu1 %v982_v14 }
  0x66   : > { %515 = vmatmul.bf16.gmra.mxu2 %v986_v15  ;;  %535 = vmatmul.bf16.gmra.mxu3 %v990_v16 }
  0x75   : > { %480 = vmatmul.bf16.gmra.mxu0 %v979_v17  ;;  %500 = vmatmul.bf16.gmra.mxu1 %v983_v18 }
  0x76   : > { %520 = vmatmul.bf16.gmra.mxu2 %v987_v19  ;;  %540 = vmatmul.bf16.gmra.mxu3 %v991_v20 }
  0x85   : > { %485 = vmatmul.bf16.gmra.mxu0 %v980_v21  ;;  %505 = vmatmul.bf16.gmra.mxu1 %v984_v22 }
  0x86   : > { %525 = vmatmul.bf16.gmra.mxu2 %v988_v23  ;;  %545 = vmatmul.bf16.gmra.mxu3 %v992_v24 }
  0xd2   : > { %v471_v25 = vpop.f32.mrf.mxu0  ;;  %v1498_v26 = vpop.f32.mrf.mxu1 }
  0xd3   : > { %551 = vst [vmem:[%s1479_s20] sm:$0xff] %v471_v25  ;;  %v624_v48 = vmul.f32 %v471_v25, %v471_v25  ;;  %v632_v12 = vmul.f32 %v1498_v26, %v1498_v26 }
  0xd4   : > { %559 = vst [vmem:[%s1479_s20 + $0x40] sm:$0xff] %v1498_v26 }
  0xd9   : > { %v1503_v27 = vpop.f32.mrf.mxu2  ;;  %v1510_v30 = vpop.f32.mrf.mxu3 }
  0xda   : > { %v473_v28 = vpop.f32.mrf.mxu0  ;;  %v1505_v29 = vpop.f32.mrf.mxu1  ;;  %567 = vst [vmem:[%s1479_s20 + $0x80] sm:$0xff] %v1503_v27 }
  0xdb   : > { %552 = vst [vmem:[%s1479_s20 + $0x8] sm:$0xff] %v473_v28  ;;  %v625_v47 = vmul.f32 %v473_v28, %v473_v28  ;;  %v584_v49 = vadd.f32 %v473_v28, %v471_v25  ;;  %v633_v15 = vmul.f32 %v1505_v29, %v1505_v29 }
  0xdc   : > { %560 = vst [vmem:[%s1479_s20 + $0x48] sm:$0xff] %v1505_v29 }
  0xdd   : > { %575 = vst [vmem:[%s1479_s20 + $0xc0] sm:$0xff] %v1510_v30  ;;  %v656_v51 = vadd.f32 %v625_v47, %v624_v48 }
  0xe1   : > { %v1516_v31 = vpop.f32.mrf.mxu2  ;;  %v1523_v34 = vpop.f32.mrf.mxu3 }
  0xe2   : > { %v476_v32 = vpop.f32.mrf.mxu0  ;;  %v1518_v33 = vpop.f32.mrf.mxu1  ;;  %568 = vst [vmem:[%s1479_s20 + $0x88] sm:$0xff] %v1516_v31 }
  0xe3   : > { %553 = vst [vmem:[%s1479_s20 + $0x10] sm:$0xff] %v476_v32  ;;  %v626_v50 = vmul.f32 %v476_v32, %v476_v32  ;;  %v585_v52 = vadd.f32 %v584_v49, %v476_v32  ;;  %v634_v18 = vmul.f32 %v1518_v33, %v1518_v33 }
  0xe4   : > { %561 = vst [vmem:[%s1479_s20 + $0x50] sm:$0xff] %v1518_v33 }
  0xe5   : > { %576 = vst [vmem:[%s1479_s20 + $0xc8] sm:$0xff] %v1523_v34  ;;  %v657_v57 = vadd.f32 %v656_v51, %v626_v50 }
  0xe9   : > { %v1529_v35 = vpop.f32.mrf.mxu2  ;;  %v1536_v38 = vpop.f32.mrf.mxu3 }
  0xea   : > { %v478_v36 = vpop.f32.mrf.mxu0  ;;  %v1531_v37 = vpop.f32.mrf.mxu1  ;;  %569 = vst [vmem:[%s1479_s20 + $0x90] sm:$0xff] %v1529_v35 }
  0xeb   : > { %554 = vst [vmem:[%s1479_s20 + $0x18] sm:$0xff] %v478_v36  ;;  %v627_v53 = vmul.f32 %v478_v36, %v478_v36  ;;  %v586_v58 = vadd.f32 %v585_v52, %v478_v36  ;;  %v635_v22 = vmul.f32 %v1531_v37, %v1531_v37 }
  0xec   : > { %562 = vst [vmem:[%s1479_s20 + $0x58] sm:$0xff] %v1531_v37 }
  0xed   : > { %577 = vst [vmem:[%s1479_s20 + $0xd0] sm:$0xff] %v1536_v38  ;;  %v658_v61 = vadd.f32 %v657_v57, %v627_v53 }
  0xf1   : > { %v1542_v39 = vpop.f32.mrf.mxu2  ;;  %v1549_v42 = vpop.f32.mrf.mxu3 }
  0xf2   : > { %v481_v40 = vpop.f32.mrf.mxu0  ;;  %v1544_v41 = vpop.f32.mrf.mxu1  ;;  %570 = vst [vmem:[%s1479_s20 + $0x98] sm:$0xff] %v1542_v39 }
  0xf3   : > { %555 = vst [vmem:[%s1479_s20 + $0x20] sm:$0xff] %v481_v40  ;;  %v628_v59 = vmul.f32 %v481_v40, %v481_v40  ;;  %v587_v62 = vadd.f32 %v586_v58, %v481_v40 }
  0xf4   : > { %563 = vst [vmem:[%s1479_s20 + $0x60] sm:$0xff] %v1544_v41 }
  0xf5   : > { %578 = vst [vmem:[%s1479_s20 + $0xd8] sm:$0xff] %v1549_v42  ;;  %v659_v0 = vadd.f32 %v658_v61, %v628_v59 }
  0xf9   : > { %v1555_v43 = vpop.f32.mrf.mxu2  ;;  %v1562_v46 = vpop.f32.mrf.mxu3 }
  0xfa   : > { %v483_v44 = vpop.f32.mrf.mxu0  ;;  %v1557_v45 = vpop.f32.mrf.mxu1  ;;  %571 = vst [vmem:[%s1479_s20 + $0xa0] sm:$0xff] %v1555_v43 }
  0xfb   : > { %556 = vst [vmem:[%s1479_s20 + $0x28] sm:$0xff] %v483_v44  ;;  %v629_v63 = vmul.f32 %v483_v44, %v483_v44  ;;  %v588_v1 = vadd.f32 %v587_v62, %v483_v44 }
  0xfc   : > { %564 = vst [vmem:[%s1479_s20 + $0x68] sm:$0xff] %v1557_v45 }
  0xfd   : > { %579 = vst [vmem:[%s1479_s20 + $0xe0] sm:$0xff] %v1562_v46  ;;  %v660_v3 = vadd.f32 %v659_v0, %v629_v63 }
 0x101   : > { %v1568_v54 = vpop.f32.mrf.mxu2  ;;  %v1575_v60 = vpop.f32.mrf.mxu3 }
 0x102   : > { %v486_v55 = vpop.f32.mrf.mxu0  ;;  %v1570_v56 = vpop.f32.mrf.mxu1  ;;  %572 = vst [vmem:[%s1479_s20 + $0xa8] sm:$0xff] %v1568_v54 }
 0x103   : > { %557 = vst [vmem:[%s1479_s20 + $0x30] sm:$0xff] %v486_v55  ;;  %v630_v2 = vmul.f32 %v486_v55, %v486_v55  ;;  %v589_v4 = vadd.f32 %v588_v1, %v486_v55 }
 0x104   : > { %565 = vst [vmem:[%s1479_s20 + $0x70] sm:$0xff] %v1570_v56 }
 0x105   : > { %580 = vst [vmem:[%s1479_s20 + $0xe8] sm:$0xff] %v1575_v60  ;;  %v661_v8 = vadd.f32 %v660_v3, %v630_v2 }
 0x109   : > { %v1582_v5 = vpop.f32.mrf.mxu2  ;;  %v1587_v11 = vpop.f32.mrf.mxu3 }
 0x10a   : > { %v488_v6 = vpop.f32.mrf.mxu0  ;;  %v508_v7 = vpop.f32.mrf.mxu1  ;;  %573 = vst [vmem:[%s1479_s20 + $0xb0] sm:$0xff] %v1582_v5 }
 0x10b   : > { %558 = vst [vmem:[%s1479_s20 + $0x38] sm:$0xff] %v488_v6  ;;  %v590_v9 = vadd.f32 %v589_v4, %v488_v6  ;;  %v631_v10 = vmul.f32 %v488_v6, %v488_v6 }
 0x10c   : > { %566 = vst [vmem:[%s1479_s20 + $0x78] sm:$0xff] %v508_v7 }
 0x10d   : > { %v591_v13 = vadd.f32 %v590_v9, %v1498_v26  ;;  %v662_v14 = vadd.f32 %v661_v8, %v631_v10  ;;  %581 = vst [vmem:[%s1479_s20 + $0xf0] sm:$0xff] %v1587_v11  ;;  %v636_v26 = vmul.f32 %v1544_v41, %v1544_v41 }
 0x10f   : > { %v592_v16 = vadd.f32 %v591_v13, %v1505_v29  ;;  %v663_v17 = vadd.f32 %v662_v14, %v632_v12 }
 0x111   : > { %v593_v19 = vadd.f32 %v592_v16, %v1518_v33  ;;  %v664_v20 = vadd.f32 %v663_v17, %v633_v15  ;;  %v528_v21 = vpop.f32.mrf.mxu2  ;;  %v1613_v25 = vpop.f32.mrf.mxu3 }
 0x112   : > { %574 = vst [vmem:[%s1479_s20 + $0xb8] sm:$0xff] %v528_v21 }
 0x113   : > { %v665_v23 = vadd.f32 %v664_v20, %v634_v18  ;;  %v594_v24 = vadd.f32 %v593_v19, %v1531_v37  ;;  %582 = vst [vmem:[%s1479_s20 + $0xf8] sm:$0xff] %v1613_v25 }
 0x115   : > { %v595_v28 = vadd.f32 %v594_v24, %v1544_v41  ;;  %v666_v29 = vadd.f32 %v665_v23, %v635_v22 }
 0x116   : > { %1205 = shalt.err (!%p1202_p7)
}
 0x117   : > { %s1330_s10 = smov 128   ;;  %s1331_s21 = smov 8   ;;  %v637_v32 = vmul.f32 %v1557_v45, %v1557_v45  ;;  %v596_v33 = vadd.f32 %v595_v28, %v1557_v45  ;;  %v667_v36 = vadd.f32 %v666_v29, %v636_v26  ;;  %v638_v40 = vmul.f32 %v1570_v56, %v1570_v56 }
 0x118   : > { %1032 = dma.vmem_to_hbm [thread:$0]  (%p1441_p5), %s1605_s7, 4096, %s1607_s8, %s696_s9, %s1330_s10, %s1330_s10, %s1331_s21   ;;  %v639_v48 = vmul.f32 %v508_v7, %v508_v7  ;;  %v640_v49 = vmul.f32 %v1503_v27, %v1503_v27  ;;  %v641_v52 = vmul.f32 %v1516_v31, %v1516_v31  ;;  %v642_v55 = vmul.f32 %v1529_v35, %v1529_v35 }
 0x119   : > { %v597_v37 = vadd.f32 %v596_v33, %v1570_v56  ;;  %v668_v41 = vadd.f32 %v667_v36, %v637_v32  ;;  %v643_v58 = vmul.f32 %v1542_v39, %v1542_v39  ;;  %v645_v0 = vmul.f32 %v1568_v54, %v1568_v54  ;;  %s1332_s12 = smov [#allocation8]   ;;  %s727_s23 = sshll.u32 %s1725_s3, 4  ;;  %s728_s23 = int_to_ptr.hbm [resolvable:$true] %s727_s23 }
 0x11a   : > { %v646_v3 = vmul.f32 %v1582_v5, %v1582_v5  ;;  %v647_v6 = vmul.f32 %v528_v21, %v528_v21  ;;  %v649_v9 = vmul.f32 %v1523_v34, %v1523_v34  ;;  %v650_v12 = vmul.f32 %v1536_v38, %v1536_v38  ;;  %s725_s27 = sshll.u32 %s1332_s12, 4  ;;  %s1333_s25 = smov [#allocation10]   ;;  %s726_s27 = int_to_ptr.vmem [resolvable:$true] %s725_s27 }
 0x11b   : > { %v669_v44 = vadd.f32 %v668_v41, %v638_v40  ;;  %v598_v47 = vadd.f32 %v597_v37, %v508_v7  ;;  %v648_v7 = vmul.f32 %v1510_v30, %v1510_v30  ;;  %v651_v14 = vmul.f32 %v1549_v42, %v1549_v42  ;;  %v583_v41 = vld [vmem:[#allocation8] sm:$0x1]  ;;  %s738_s30 = sshll.u32 %s1333_s25, 4  ;;  %s740_s8 = sshll.u32 %s1726_s4, 4  ;;  %s739_s30 = int_to_ptr.vmem [resolvable:$true] %s738_s30  ;;  %s741_s8 = int_to_ptr.hbm [resolvable:$true] %s740_s8 }
 0x11c   : > { %v653_v19 = vmul.f32 %v1575_v60, %v1575_v60  ;;  %v654_v22 = vmul.f32 %v1587_v11, %v1587_v11  ;;  %v655_v24 = vmul.f32 %v1613_v25, %v1613_v25 }
 0x11d   : > { %v599_v50 = vadd.f32 %v598_v47, %v1503_v27  ;;  %v670_v51 = vadd.f32 %v669_v44, %v639_v48  ;;  %v644_v27 = vmul.f32 %v1555_v43, %v1555_v43  ;;  %v623_v44 = vld [vmem:[#allocation10] sm:$0x1] }
 0x11f   : > { %v600_v45 = vadd.f32 %v599_v50, %v1516_v31  ;;  %v671_v53 = vadd.f32 %v670_v51, %v640_v49 }
 0x121   : > { %v601_v56 = vadd.f32 %v600_v45, %v1529_v35  ;;  %v672_v57 = vadd.f32 %v671_v53, %v641_v52 }
 0x123   : > { %v673_v59 = vadd.f32 %v672_v57, %v642_v55  ;;  %v602_v61 = vadd.f32 %v601_v56, %v1542_v39 }
 0x125   : > { %v603_v62 = vadd.f32 %v602_v61, %v1555_v43  ;;  %v674_v63 = vadd.f32 %v673_v59, %v643_v58 }
 0x127   : > { %v604_v31 = vadd.f32 %v603_v62, %v1568_v54  ;;  %v675_v1 = vadd.f32 %v674_v63, %v644_v27 }
 0x129   : > { %v676_v35 = vadd.f32 %v675_v1, %v645_v0  ;;  %v605_v2 = vadd.f32 %v604_v31, %v1582_v5 }
 0x12b   : > { %v677_v4 = vadd.f32 %v676_v35, %v646_v3  ;;  %v606_v39 = vadd.f32 %v605_v2, %v528_v21 }
 0x12d   : > { %v607_v43 = vadd.f32 %v606_v39, %v1510_v30  ;;  %v678_v8 = vadd.f32 %v677_v4, %v647_v6  ;;  %v652_v30 = vmul.f32 %v1562_v46, %v1562_v46 }
 0x12f   : > { %v608_v54 = vadd.f32 %v607_v43, %v1523_v34  ;;  %v679_v10 = vadd.f32 %v678_v8, %v648_v7 }
 0x131   : > { %v609_v5 = vadd.f32 %v608_v54, %v1536_v38  ;;  %v680_v13 = vadd.f32 %v679_v10, %v649_v9 }
 0x133   : > { %v681_v15 = vadd.f32 %v680_v13, %v650_v12  ;;  %v610_v16 = vadd.f32 %v609_v5, %v1549_v42 }
 0x135   : > { %v611_v17 = vadd.f32 %v610_v16, %v1562_v46  ;;  %v682_v18 = vadd.f32 %v681_v15, %v651_v14 }
 0x137   : > { %v612_v34 = vadd.f32 %v611_v17, %v1575_v60  ;;  %v683_v20 = vadd.f32 %v682_v18, %v652_v30 }
 0x139   : > { %v684_v38 = vadd.f32 %v683_v20, %v653_v19  ;;  %v613_v21 = vadd.f32 %v612_v34, %v1587_v11 }
 0x13b   : > { %v685_v23 = vadd.f32 %v684_v38, %v654_v22  ;;  %v614_v42 = vadd.f32 %v613_v21, %v1613_v25 }
 0x13d   : > { %v615_v46 = vrot.slane %v614_v42, 4  ;;  %v686_v26 = vadd.f32 %v685_v23, %v655_v24 }
 0x13f   : > { %v616_v28 = vadd.f32 %v615_v46, %v614_v42  ;;  %v687_v29 = vrot.slane %v686_v26, 4 }
 0x141   : > { %v617_v32 = vrot.slane %v616_v28, 2  ;;  %v688_v33 = vadd.f32 %v687_v29, %v686_v26 }
 0x143   : > { %v618_v60 = vadd.f32 %v617_v32, %v616_v28  ;;  %v689_v36 = vrot.slane %v688_v33, 2 }
 0x145   : > { %v690_v37 = vadd.f32 %v689_v36, %v688_v33  ;;  %v619_v40 = vrot.slane %v618_v60, 1 }
 0x147   : > { %v620_v11 = vadd.f32 %v619_v40, %v618_v60  ;;  %v691_v25 = vrot.slane %v690_v37, 1 }
 0x149   : > { %v621_v47 = vadd.f32 %v620_v11, %v583_v41  ;;  %v692_v48 = vadd.f32 %v691_v25, %v690_v37 }
 0x14b   : > { %622 = vst [vmem:[#allocation8] sm:$0x1] %v621_v47  ;;  %v693_v49 = vadd.f32 %v692_v48, %v623_v44 }
 0x14c   : > { %1034 = dma.vmem_to_hbm [thread:$0]  (%p1397_p2), %s726_s27, 16, %s728_s23, [#allocation9]  }
 0x14d   : > { %694 = vst [vmem:[#allocation10] sm:$0x1] %v693_v49 }
 0x14e   : > { %1036 = dma.vmem_to_hbm [thread:$0]  (%p1397_p2), %s739_s30, 16, %s741_s8, [#allocation9]  }
 0x14f   : > { %1295 = dma.done.wait (%p1397_p2), [#allocation9], 32  }
 0x150   : > { %1297 = vsyncadd (%p1397_p2), [#allocation9], 4294967264 }
 0x151 PF: > { %s1745_s9 = sld [smem:[#allocation15_spill]]  ;;  %s762_s11 = sand.u32 1, %s1304_s15  }
 0x152   : > { %p1051_p5 = pnand %p862_p11, %p1408_p6  ;;  %s763_s14 = scalar_lea.sflag [#allocation4], %s762_s11 }
 0x154   : > { %p1052_p9 = pneg %p1051_p5 }
 0x156   : > { %1299 = dma.done.wait (%p1052_p9), %s763_s14, 4096  }
 0x157   : > { %1301 = vsyncadd (%p1052_p9), %s763_s14, 4294963200  ;;  %s23_s20 = sadd.s32 1, %s1745_s9   ;;  %s1746_s24 = sld [smem:[#allocation16_spill]] }
 0x158   : > { %p20_p10 = scmp.ge.s32.totalorder %s23_s20, 4   ;;  %s1747_s15 = smov %s1308_s16 }
 0x159   : > { %s1748_s16 = smov %s1312_s17  ;;  %s1749_s17 = smov %s1450_s22 }
 0x15a   : > { %s1750_s18 = smov %s1320_s19  ;;  %22 = sbr.rel (!%p20_p10) target bundleno = 10 (0xa), region = 100 }
 0x15d   : > { %s1751_s19 = smov %s1746_s24 }
 0x15f   :  { %769 = vsyncpa [#allocation3], 1 }
 0x160   :  { %771 = vsyncpa [#allocation3 + $0x1], 1 }
 0x161   :  { %772 = vsyncpa [#allocation6], 1 }
 0x162   :  { %773 = vsyncpa [#allocation4], 1 }
 0x163   :  { %775 = vsyncpa [#allocation4 + $0x1], 1 }
 0x164   :  { %776 = vsyncpa [#allocation9], 1 }

</bundles_post_ra>
